<compile_context>
chip_gen: v6e
topology: v6e:2x2x1
jax: 0.10.0
libtpu: 0.0.40
codegen_flags: <defaults>
</compile_context>

<pallas_src>
import jax
import jax.numpy as jnp
from jax.experimental import pallas as pl
from jax.experimental.pallas import tpu as pltpu

EPS = 1e-05


def _round_up(x, m):
    return (x + m - 1) // m * m


def _vmem_capacity_bytes():
    """Physical VMEM per TensorCore (generation-aware); conservative fallback."""
    try:
        cap = getattr(pltpu.get_tpu_info(), "vmem_capacity_bytes", None)
        if cap:
            return int(cap)
    except Exception:
        pass
    return 64 << 20  # v7x per-TC VMEM (smallest of v5e/v6e/v7x)


def _prenorm_kernel(x_ref, w_ref, b_ref, o_ref):
    # x_ref: (1, C, T_HW) block for one batch element / one lane tile.
    x = x_ref[0].astype(jnp.float32)                # upcast for stats (bf16 I/O path)
    inv_c = 1.0 / x.shape[0]

    # Two-pass moments over the channel (sublane) axis — numerically matches the
    # reference's mean((x - mean)^2) and avoids E[x^2] - E[x]^2 cancellation.
    mean = jnp.sum(x, axis=0, keepdims=True) * inv_c          # (1, T_HW)
    xc = x - mean
    var = jnp.sum(xc * xc, axis=0, keepdims=True) * inv_c     # biased variance
    inv = 1.0 / (jnp.sqrt(var) + EPS)               # eps added to std, as in the module
    x_hat = xc * inv                                # (C, T_HW)

    # fn := 1x1 conv over channels; LN affine + conv bias folded into w_eff / b_eff by
    # the wrapper.  Weight arrives already in the MXU operand dtype (no per-step cast).
    y = jnp.dot(w_ref[...], x_hat.astype(w_ref.dtype),
                preferred_element_type=jnp.float32)           # (C, T_HW) f32 accum
    o_ref[0] = (y + b_ref[...]).astype(o_ref.dtype)


def _choose_tile_hw(N, C, hw_pad, in_isz, out_isz, w_isz, budget_bytes,
                    target_steps=8, target_tile=1024):
    """Lane tile: multiple of 128 dividing hw_pad, VMEM-bounded, with enough grid
    steps for v7x's two TensorCores and the DMA pipeline when the shape allows."""
    n_lanes = hw_pad // 128
    # Bytes resident regardless of tile: folded weight (conservatively x2 buffers),
    # bias, plus 1 MiB headroom.
    fixed = 2 * C * C * w_isz + C * 4 + (1 << 20)
    per_d = 2 * C * 128 * (in_isz + out_isz)        # double-buffered in+out per 128 lanes
    avail = max(budget_bytes - fixed, per_d)
    max_d = min(max(1, avail // per_d), max(1, target_tile // 128), n_lanes)
    divisors = [d for d in range(1, n_lanes + 1) if n_lanes % d == 0 and d <= max_d]
    if not divisors:
        divisors = [1]
    # Largest tile that still gives >= target_steps total grid steps; otherwise the
    # most steps while keeping the tile >= 256 lanes (DMA efficiency floor).
    good = [d for d in divisors if N * (n_lanes // d) >= target_steps]
    if good:
        return 128 * max(good)
    floor = [d for d in divisors if d >= 2]
    return 128 * (min(floor) if floor else divisors[0])


def prenorm_forward(x_nchw, g, b, conv_w, conv_b, *, tile_hw=None, mxu_dtype=None):
    """x_nchw: (N, C, H, W).  g, b: LayerNorm affine (any shape with C elements).
    conv_w: (C, C) 1x1-conv weight.  conv_b: (C,) or (C, 1) conv bias.
    Output dtype == input dtype (bf16 in -> bf16 out halves HBM traffic)."""
    N, C, H, W = x_nchw.shape
    HW = H * W
    in_dtype = x_nchw.dtype

    # MXU operand dtype: bf16 only when I/O is bf16 (no accuracy given away on the
    # f32 path; no wall-clock win from bf16 operands alone while HBM-bound).
    if mxu_dtype is None:
        mxu_dtype = jnp.bfloat16 if in_dtype == jnp.bfloat16 else jnp.float32

    # Fold LayerNorm affine and conv bias into the conv weight (exact algebra):
    #   W @ (x_hat * g + b) + cb == (W * g^T) @ x_hat + (W @ b + cb)
    g_vec = g.reshape(C).astype(jnp.float32)
    b_vec = b.reshape(C).astype(jnp.float32)
    w_f32 = conv_w.astype(jnp.float32)
    w_eff = (w_f32 * g_vec[None, :]).astype(mxu_dtype)                     # (C, C), pre-cast
    b_eff = (w_f32 @ b_vec + conv_b.reshape(C).astype(jnp.float32)).reshape(C, 1)

    # Pad only to the 128-lane width (not the tile size); zero columns keep finite
    # stats (mean=0, std=0 -> x_hat=0) and are cropped afterwards.
    hw_pad = _round_up(HW, 128)
    x = x_nchw.reshape(N, C, HW)
    if hw_pad != HW:
        x = jnp.pad(x, ((0, 0), (0, 0), (0, hw_pad - HW)))

    in_isz = jnp.dtype(in_dtype).itemsize
    out_isz = in_isz
    w_isz = jnp.dtype(mxu_dtype).itemsize
    vmem_cap = _vmem_capacity_bytes()
    tiling_budget = min(vmem_cap // 2, 48 << 20)    # v7x ~32 MiB, v5e/v6e ~48 MiB

    if tile_hw is not None:
        t_hw = int(tile_hw)
        assert t_hw % 128 == 0 and hw_pad % t_hw == 0, "tile_hw must be a 128-multiple divisor"
    else:
        t_hw = _choose_tile_hw(N, C, hw_pad, in_isz, out_isz, w_isz, tiling_budget)
    n_tiles = hw_pad // t_hw

    # Scoped-VMEM sizing: never below the estimate (tile already bounded by budget),
    # capped just under physical capacity.
    vmem_est = (2 * C * t_hw * (in_isz + out_isz)   # double-buffered in/out blocks
                + 2 * C * C * w_isz                 # resident folded weight (x2 buffers)
                + 2 * C * 4                         # folded bias
                + (2 << 20))                        # headroom
    vmem_limit = int(min(max(vmem_est, 32 << 20), vmem_cap - (2 << 20)))
    vmem_limit = max(vmem_limit, int(vmem_est))

    out = pl.pallas_call(
        _prenorm_kernel,
        out_shape=jax.ShapeDtypeStruct((N, C, hw_pad), in_dtype),
        grid_spec=pltpu.PrefetchScalarGridSpec(
            num_scalar_prefetch=0,
            grid=(N, n_tiles),
            in_specs=[
                pl.BlockSpec((1, C, t_hw), lambda n, j: (n, 0, j)),   # x tile
                pl.BlockSpec((C, C), lambda n, j: (0, 0)),            # folded weight
                pl.BlockSpec((C, 1), lambda n, j: (0, 0)),            # folded bias
            ],
            out_specs=pl.BlockSpec((1, C, t_hw), lambda n, j: (n, 0, j)),
        ),
        compiler_params=pltpu.CompilerParams(
            dimension_semantics=("parallel", "parallel"),
            vmem_limit_bytes=vmem_limit,
        ),
    )(x, w_eff, b_eff)

    if hw_pad != HW:
        out = out[:, :, :HW]
    return out.reshape(N, C, H, W)


def prenorm_reference(x, g, b, conv_w, conv_b):
    """Pure-JAX reference matching the PyTorch forward exactly (eps on std)."""
    x = x.astype(jnp.float32)
    mean = jnp.mean(x, axis=1, keepdims=True)
    var = jnp.mean((x - mean) ** 2, axis=1, keepdims=True)   # unbiased=False
    std = jnp.sqrt(var)
    xn = (x - mean) / (std + EPS) * g.reshape(1, -1, 1, 1) + b.reshape(1, -1, 1, 1)
    y = jnp.einsum("oc,nchw->nohw", conv_w, xn) + conv_b.reshape(1, -1, 1, 1)
    return y


if __name__ == "__main__":
    key = jax.random.PRNGKey(0)
    N, C, H, W = 2, 4, 16, 16
    k_x, k_w, k_b = jax.random.split(key, 3)

    x = jax.random.normal(k_x, (N, C, H, W), dtype=jnp.float32)

    # LayerNorm params: g = ones(1, dim, 1, 1), b = zeros(1, dim, 1, 1)
    g = jnp.ones((1, C, 1, 1), dtype=jnp.float32)
    b = jnp.zeros((1, C, 1, 1), dtype=jnp.float32)

    # fn := deterministic 1x1 Conv2d(dim, dim)
    conv_w = jax.random.normal(k_w, (C, C), dtype=jnp.float32) * 0.1
    conv_b = jax.random.normal(k_b, (C,), dtype=jnp.float32) * 0.1

    # f32 path (tight tolerance vs reference)
    out = jax.block_until_ready(prenorm_forward(x, g, b, conv_w, conv_b))
    ref = prenorm_reference(x, g, b, conv_w, conv_b)
    assert out.shape == (N, C, H, W) and out.dtype == jnp.float32
    assert jnp.allclose(out, ref, atol=1e-5, rtol=1e-5), "f32 mismatch vs reference"

    # bf16 I/O + bf16 MXU path (halves HBM bytes on this memory-bound kernel)
    x_bf = x.astype(jnp.bfloat16)
    out_bf = jax.block_until_ready(prenorm_forward(x_bf, g, b, conv_w, conv_b))
    ref_bf = prenorm_reference(x_bf.astype(jnp.float32), g, b, conv_w, conv_b)
    assert out_bf.shape == (N, C, H, W) and out_bf.dtype == jnp.bfloat16
    assert bool(jnp.all(jnp.isfinite(out_bf.astype(jnp.float32))))
    assert jnp.allclose(out_bf.astype(jnp.float32), ref_bf, atol=5e-2, rtol=5e-2), \
        "bf16 mismatch vs reference"

    # Non-128-multiple spatial size: exercises the pad-to-128 (only) tail path
    x_odd = jax.random.normal(k_x, (N, C, 10, 10), dtype=jnp.float32)
    out_odd = jax.block_until_ready(prenorm_forward(x_odd, g, b, conv_w, conv_b))
    ref_odd = prenorm_reference(x_odd, g, b, conv_w, conv_b)
    assert out_odd.shape == (N, C, 10, 10)
    assert jnp.allclose(out_odd, ref_odd, atol=1e-5, rtol=1e-5), "ragged mismatch vs reference"

    print("KERNEL_OK")
</pallas_src>

<mosaic_0001>
module attributes {stable_mosaic.version = 11 : i64} {
  func.func @_prenorm_kernel(%arg0: i32, %arg1: i32, %arg2: memref<1x4x256xf32, #tpu.memory_space<vmem>>, %arg3: memref<4x4xf32, #tpu.memory_space<vmem>>, %arg4: memref<4x1xf32, #tpu.memory_space<vmem>>, %arg5: memref<1x4x256xf32, #tpu.memory_space<vmem>>) attributes {dimension_semantics = [#tpu.dimension_semantics<parallel>, #tpu.dimension_semantics<parallel>], iteration_bounds = array<i64: 2, 1>, scalar_prefetch = 0 : i64, scratch_operands = 0 : i64, tpu.core_type = #tpu.core_type<tc>, window_params = [{transform_indices = @transform_0, window_bounds = array<i64: 1, 4, 256>}, {pipeline_mode = #tpu.pipeline_mode<synchronous>, transform_indices = @transform_1, window_bounds = array<i64: 4, 4>}, {pipeline_mode = #tpu.pipeline_mode<synchronous>, transform_indices = @transform_2, window_bounds = array<i64: 4, 1>}, {transform_indices = @transform_3, window_bounds = array<i64: 1, 4, 256>}]} {
    %c0 = arith.constant 0 : index
    %c0_0 = arith.constant 0 : index
    %c0_1 = arith.constant 0 : index
    %0 = vector.load %arg2[%c0, %c0_0, %c0_1] : memref<1x4x256xf32, #tpu.memory_space<vmem>>, vector<1x4x256xf32>
    %1 = vector.shape_cast %0 : vector<1x4x256xf32> to vector<4x256xf32>
    %cst = arith.constant dense<0.000000e+00> : vector<256xf32>
    %2 = vector.multi_reduction <add>, %1, %cst [0] : vector<4x256xf32> to vector<256xf32>
    %3 = vector.shape_cast %2 : vector<256xf32> to vector<1x256xf32>
    %cst_2 = arith.constant 2.500000e-01 : f32
    %4 = vector.broadcast %cst_2 : f32 to vector<1x256xf32>
    %5 = arith.mulf %3, %4 : vector<1x256xf32>
    %6 = vector.broadcast %5 : vector<1x256xf32> to vector<4x256xf32>
    %7 = arith.subf %1, %6 : vector<4x256xf32>
    %8 = arith.mulf %7, %7 : vector<4x256xf32>
    %cst_3 = arith.constant dense<0.000000e+00> : vector<256xf32>
    %9 = vector.multi_reduction <add>, %8, %cst_3 [0] : vector<4x256xf32> to vector<256xf32>
    %10 = vector.shape_cast %9 : vector<256xf32> to vector<1x256xf32>
    %cst_4 = arith.constant 2.500000e-01 : f32
    %11 = vector.broadcast %cst_4 : f32 to vector<1x256xf32>
    %12 = arith.mulf %10, %11 : vector<1x256xf32>
    %13 = math.sqrt %12 : vector<1x256xf32>
    %cst_5 = arith.constant 9.99999974E-6 : f32
    %14 = vector.broadcast %cst_5 : f32 to vector<1x256xf32>
    %15 = arith.addf %13, %14 : vector<1x256xf32>
    %cst_6 = arith.constant 1.000000e+00 : f32
    %16 = vector.broadcast %cst_6 : f32 to vector<1x256xf32>
    %17 = arith.divf %16, %15 : vector<1x256xf32>
    %18 = vector.broadcast %17 : vector<1x256xf32> to vector<4x256xf32>
    %19 = arith.mulf %7, %18 : vector<4x256xf32>
    %c0_7 = arith.constant 0 : index
    %c0_8 = arith.constant 0 : index
    %20 = vector.load %arg3[%c0_7, %c0_8] : memref<4x4xf32, #tpu.memory_space<vmem>>, vector<4x4xf32>
    %cst_9 = arith.constant dense<0.000000e+00> : vector<4x256xf32>
    %21 = tpu.matmul %20, %19, %cst_9 {dimension_numbers = #tpu.dot_dimension_numbers<[1], [0], [0], [1], [0, 0, 1, 1], [], []>} : vector<4x4xf32>, vector<4x256xf32>, vector<4x256xf32> -> vector<4x256xf32>
    %c0_10 = arith.constant 0 : index
    %c0_11 = arith.constant 0 : index
    %22 = vector.load %arg4[%c0_10, %c0_11] : memref<4x1xf32, #tpu.memory_space<vmem>>, vector<4x1xf32>
    %23 = vector.broadcast %22 : vector<4x1xf32> to vector<4x256xf32>
    %24 = arith.addf %21, %23 : vector<4x256xf32>
    %c0_12 = arith.constant 0 : index
    %c0_13 = arith.constant 0 : index
    %c0_14 = arith.constant 0 : index
    %25 = vector.load %arg5[%c0_12, %c0_13, %c0_14] : memref<1x4x256xf32, #tpu.memory_space<vmem>>, vector<1x4x256xf32>
    %26 = vector.shape_cast %25 : vector<1x4x256xf32> to vector<4x256xf32>
    %27 = vector.shape_cast %24 : vector<4x256xf32> to vector<1x4x256xf32>
    tpu.vector_store %arg5[%c0_12, %c0_13, %c0_14], %27 {strides = array<i32>} : memref<1x4x256xf32, #tpu.memory_space<vmem>>, vector<1x4x256xf32>,
    return
  }
  func.func @transform_0(%arg0: i32, %arg1: i32) -> (i32, i32, i32) {
    %c0_i32 = arith.constant 0 : i32
    %c0_i32_0 = arith.constant 0 : i32
    return %arg0, %c0_i32, %arg1 : i32, i32, i32
  }
  func.func @transform_1(%arg0: i32, %arg1: i32) -> (i32, i32) {
    %c0_i32 = arith.constant 0 : i32
    %c0_i32_0 = arith.constant 0 : i32
    %c0_i32_1 = arith.constant 0 : i32
    return %c0_i32, %c0_i32_0 : i32, i32
  }
  func.func @transform_2(%arg0: i32, %arg1: i32) -> (i32, i32) {
    %c0_i32 = arith.constant 0 : i32
    %c0_i32_0 = arith.constant 0 : i32
    %c0_i32_1 = arith.constant 0 : i32
    return %c0_i32, %c0_i32_0 : i32, i32
  }
  func.func @transform_3(%arg0: i32, %arg1: i32) -> (i32, i32, i32) {
    %c0_i32 = arith.constant 0 : i32
    %c0_i32_0 = arith.constant 0 : i32
    return %arg0, %c0_i32, %arg1 : i32, i32, i32
  }
}

</mosaic_0001>

<bundles_post_ra>
// kernel: tpu_custom_call.1
= control target key start
LH: loop header
LB: loop body
LE: loop exit
PB: predicated region body
PF: predicated region fallthrough
CT: control target
= control target key end

     0   :  { %8 = vsyncpa [#allocation3], 0  ;;  %s850_s0 = inlined_call_operand.hbm [shape: f32[2,4,256], index: 0, kind: input, shape index: {}]   ;;  %s851_s1 = inlined_call_operand.vmem [shape: f32[4,4], index: 1, kind: input, shape index: {}]   ;;  %s852_s2 = inlined_call_operand.vmem [shape: f32[4,1], index: 2, kind: input, shape index: {}]   ;;  %s853_s3 = inlined_call_operand.hbm [shape: f32[2,4,256], index: 3, kind: output, shape index: {}]  }
   0x1   :  { %10 = vsyncpa [#allocation3 + $0x1], 0 }
   0x2   :  { %11 = vsyncpa [#allocation4], 0 }
   0x3   :  { %13 = vsyncpa [#allocation4 + $0x1], 0  ;;  %s700_s12 = smov 0   ;;  %s702_s13 = smov 0  }
   0x4   :  { %s704_s14 = smov 0   ;;  %s706_s15 = smov 0  }
   0x5   :  { %s708_s16 = smov 0   ;;  %s710_s17 = smov 0  }
   0x6 LB: > { %s472_s18 = sadd.s32 4294967295, %s674_s17   ;;  %s473_s19 = sadd.s32 4294967294, %s674_s17   ;;  %s674_s17 = sphi %s710_s17, %s19_s17   ;;  %s670_s16 = sphi %s708_s16, %s865_s16   ;;  %s666_s15 = sphi %s706_s15, %s864_s15   ;;  %s662_s14 = sphi %s704_s14, %s863_s14   ;;  %s658_s13 = sphi %s702_s13, %s862_s13   ;;  %s654_s12 = sphi %s700_s12, %s861_s12  }
   0x7   : > { %s31_s20 = sadd.s32 1, %s670_s16  ;;  %s40_s21 = sadd.s32 1, %s662_s14 }
   0x8   : > { %p33_p0 = scmp.ge.s32.totalorder %s31_s20, 2  ;;  %p47_p1 = scmp.ne.s32.totalorder %s662_s14, %s658_s13 }
   0x9   : > { %p48_p2 = scmp.eq.s32.totalorder %s674_s17, 0  ;;  %p53_p3 = scmp.ne.s32.totalorder %s658_s13, %s654_s12 }
   0xa   : > { %s867_s20 = smov (%p33_p0, %s31_s20), 0  ;;  %p54_p5 = scmp.eq.s32.totalorder %s472_s18, 0 }
   0xb   : > { %p741_p4 = por %p48_p2, %p47_p1  ;;  %s35_s23 = ssub.s32 %s670_s16, %s867_s20 }
   0xc   : > { %p121_p6 = scmp.eq.s32.totalorder %s472_s18, 1  ;;  %p38_p7 = scmp.eq.s32.totalorder %s35_s23, 0 }
   0xd   : > { %p747_p8 = por %p54_p5, %p53_p3  ;;  %p127_p10 = scmp.eq.s32.totalorder %s473_s19, 1 }
   0xe   : > { %p751_p9 = por %p121_p6, %p47_p1  ;;  %p504_p13 = scmp.lt.s32.totalorder %s674_s17, 2 }
   0xf   : > { %s756_s26 = scalar_select %p38_p7, %s662_s14, %s40_s21  }
  0x10   : > { %p758_p11 = por %p127_p10, %p53_p3  ;;  %s153_s28 = sand.u32 1, %s662_s14  }
  0x11   : > { %s476_s29 = sshll.u32 %s153_s28, 3  ;;  %s490_s30 = sshll.u32 %s670_s16, 7 }
  0x12   : > { %s857_s27 = scalar_select %p758_p11, 1, 0 }
  0x13   : > { %s165_s6 = scalar_lea.hbm %s850_s0, %s490_s30  ;;  %s157_s7 = scalar_lea.vmem [#allocation2], %s476_s29 }
  0x14   : > { %s167_s8 = sshll.u32 %s157_s7, 4  ;;  %p771_p0 = pnand %p504_p13, %p741_p4  ;;  %s168_s8 = int_to_ptr.vmem [resolvable:$true] %s167_s8 }
  0x15   : > { %p479_p1 = scmp.ge.s32.totalorder %s674_s17, 1  ;;  %p172_p2 = scmp.lt.s32.totalorder %s674_s17, 3 }
  0x16   : > { %s154_s10 = scalar_lea.sflag [#allocation3], %s153_s28  ;;  %p568_p3 = pneg %p771_p0 }
  0x17   : > { %s579_s11 = scalar_lea.vmem %s168_s8, 128  ;;  %s676_s18 = smov [#allocation2]  }
  0x18   : > { %p580_p5 = scmp.ne.s32.totalorder %s168_s8, %s579_s11  ;;  %s584_s19 = sshll.u32 %s676_s18, 4  ;;  %s585_s19 = int_to_ptr.vmem [resolvable:$false] %s584_s19 }
  0x19   : > { %s586_s21 = scalar_lea.vmem %s585_s19, 256  ;;  %p587_p10 = scmp.lt.s32.totalorder %s168_s8, %s585_s19 }
  0x1a   : > { %p582_p6 = pnand %p580_p5, %p568_p3  ;;  %p588_p12 = scmp.lt.s32.totalorder %s586_s21, %s579_s11 }
  0x1c   : > { %p583_p7 = pneg %p582_p6  ;;  %p589_p4 = por %p588_p12, %p587_p10 }
  0x1e   : > { %p590_p13 = pnand %p589_p4, %p583_p7 }
  0x20   : > { %593 = shalt.err (!%p590_p13)
}
  0x21   : > { %499 = dma.hbm_to_vmem [thread:$0]  (!%p771_p0), %s165_s6, 128, %s168_s8, %s154_s10  }
  0x22   : > { %p173_p11 = pnand %p479_p1, %p172_p2 }
  0x23   : > { %s786_s22 = sand.u32 (!%p173_p11), 1, %s658_s13  }
  0x24   : > { %176 = sbr.rel (%p173_p11) target bundleno = 337 (0x151), region = 32  ;;  %s480_s23 = sshll.u32 (!%p173_p11), %s786_s22, 3 }
  0x25   : > { %s179_s28 = scalar_lea.sflag (!%p173_p11), [#allocation3], %s786_s22  ;;  %s182_s29 = scalar_lea.vmem (!%p173_p11), [#allocation2], %s480_s23 }
  0x29   : > { %645 = dma.done.wait (%p747_p8), %s179_s28, 128  }
  0x2a   : > { %647 = vsyncadd (%p747_p8), %s179_s28, 4294967168  ;;  %v677_v0 = vmov 0.0   ;;  %v678_v1 = vmov 0   ;;  %vm211_vm0 = vcmask 1043456   ;;  %v207_v2 = vld [vmem:[%s182_s29] sm:$0xff]  ;;  %vm287_vm5 = vcmask 31744  }
  0x2b   : > { %359 = vmatprep.mubr.f32.mxu0 %v677_v0  ;;  %556 = vset.pattern.permute.xlu0 %v678_v1  ;;  %v279_v3 = vld [vmem:[%s852_s2] sm:$0xf]  ;;  %v209_v4 = vcombine.high %v207_v2, %v207_v2  ;;  %v212_v5 = vsel %vm211_vm0, %v207_v2, 0.0  ;;  %s491_s6 = sshll.u32 %s666_s15, 7  ;;  %s204_s7 = scalar_lea.vmem [#allocation5], %s480_s23 }
  0x2c   : > { %282 = vperm.xlu0 %556, %v279_v3   ;;  %v213_v6 = vrot.slane %v212_v5, 4  ;;  %v278_v58 = vld [vmem:[%s851_s1] sm:$0xf]  ;;  %s388_s8 = sshll.u32 %s204_s7, 4  ;;  %s386_s11 = scalar_lea.hbm %s853_s3, %s491_s6  ;;  %s389_s8 = int_to_ptr.vmem [resolvable:$true] %s388_s8 }
  0x2d   : > { %v219_v7 = vsel %vm211_vm0, %v209_v4, 0.0  ;;  %s372_s18 = scalar_lea.sflag [#allocation4], %s786_s22  ;;  %s594_s19 = scalar_lea.vmem %s389_s8, 128 }
  0x2e   : > { %v214_v8 = vadd.f32 %v213_v6, %v212_v5  ;;  %v220_v9 = vrot.slane %v219_v7, 4  ;;  %p595_p8 = scmp.ne.s32.totalorder %s389_s8, %s594_s19  ;;  %s679_s21 = smov [#allocation5]  }
  0x2f   : > { %s598_s15 = sshll.u32 %s679_s21, 4  ;;  %s599_s15 = int_to_ptr.vmem [resolvable:$false] %s598_s15 }
  0x30   : > { %v215_v10 = vrot.slane %v214_v8, 2  ;;  %v221_v11 = vadd.f32 %v220_v9, %v219_v7  ;;  %p596_p11 = pnand %p595_p8, %p751_p9  ;;  %s600_s23 = scalar_lea.vmem %s599_s15, 256 }
  0x31   : > { %p601_p0 = scmp.lt.s32.totalorder %s389_s8, %s599_s15  ;;  %p602_p1 = scmp.lt.s32.totalorder %s600_s23, %s594_s19 }
  0x32   : > { %v216_v12 = vadd.f32 %v215_v10, %v214_v8  ;;  %v222_v13 = vrot.slane %v221_v11, 2  ;;  %p597_p12 = pneg %p596_p11 }
  0x33   : > { %p603_p2 = por %p602_p1, %p601_p0 }
  0x34   : > { %v217_v14 = vrot.slane %v216_v12, 1  ;;  %v223_v15 = vadd.f32 %v222_v13, %v221_v11 }
  0x35   : > { %p604_p3 = pnand %p603_p2, %p597_p12 }
  0x36   : > { %v218_v16 = vadd.f32 %v217_v14, %v216_v12  ;;  %v224_v17 = vrot.slane %v223_v15, 1 }
  0x38   : > { %v225_v18 = vadd.f32 %v224_v17, %v223_v15  ;;  %v226_v19 = vmul.f32 0.25, %v218_v16 }
  0x3a   : > { %v227_v20 = vmul.f32 0.25, %v225_v18 }
  0x3c   : > { %v230_v21 = vcombine.low %v226_v19, %v227_v20 }
  0x3e   : > { %v232_v22 = vsub.f32 %v207_v2, %v230_v21 }
  0x40   : > { %v233_v23 = vmul.f32 %v232_v22, %v232_v22 }
  0x42   : > { %v235_v24 = vcombine.high %v233_v23, %v233_v23  ;;  %v237_v25 = vsel %vm211_vm0, %v233_v23, 0.0 }
  0x43   : > { %v238_v26 = vrot.slane %v237_v25, 4 }
  0x44   : > { %v244_v27 = vsel %vm211_vm0, %v235_v24, 0.0 }
  0x45   : > { %v239_v28 = vadd.f32 %v238_v26, %v237_v25  ;;  %v245_v29 = vrot.slane %v244_v27, 4 }
  0x47   : > { %v240_v30 = vrot.slane %v239_v28, 2  ;;  %v246_v31 = vadd.f32 %v245_v29, %v244_v27 }
  0x49   : > { %v241_v32 = vadd.f32 %v240_v30, %v239_v28  ;;  %v247_v33 = vrot.slane %v246_v31, 2 }
  0x4b   : > { %v242_v34 = vrot.slane %v241_v32, 1  ;;  %v248_v35 = vadd.f32 %v247_v33, %v246_v31 }
  0x4d   : > { %v243_v36 = vadd.f32 %v242_v34, %v241_v32  ;;  %v249_v37 = vrot.slane %v248_v35, 1 }
  0x4f   : > { %v250_v38 = vadd.f32 %v249_v37, %v248_v35  ;;  %v251_v39 = vmul.f32 0.25, %v243_v36 }
  0x51   : > { %v252_v40 = vmul.f32 0.25, %v250_v38  ;;  %558 = vrsqrt.f32 %v251_v39  ;;  %vm255_vm1 = vcmp.eq.f32.partialorder %v251_v39, inf  ;;  %v258_v42 = vand.u32 2147483648, %v251_v39 }
  0x52   : > { %vm257_vm2 = vcmp.eq.f32.partialorder %v251_v39, 0.0 }
  0x53   : > { %560 = vrsqrt.f32 %v252_v40  ;;  %vm262_vm3 = vcmp.eq.f32.partialorder %v252_v40, inf  ;;  %v265_v45 = vand.u32 2147483648, %v252_v40  ;;  %vm264_vm4 = vcmp.eq.f32.partialorder %v252_v40, 0.0 }
  0x5e   : > { %v559_v41 = vpop.eup %558 }
  0x5f   : > { %v254_v43 = vmul.f32 %v559_v41, %v251_v39 }
  0x60   : > { %v561_v44 = vpop.eup %560 }
  0x61   : > { %v256_v46 = vsel %vm255_vm1, %v251_v39, %v254_v43  ;;  %v261_v47 = vmul.f32 %v561_v44, %v252_v40 }
  0x62   : > { %v259_v48 = vsel %vm257_vm2, %v258_v42, %v256_v46 }
  0x63   : > { %v263_v49 = vsel %vm262_vm3, %v252_v40, %v261_v47  ;;  %v267_v50 = vadd.f32 1e-05, %v259_v48 }
  0x64   : > { %v266_v51 = vsel %vm264_vm4, %v265_v45, %v263_v49 }
  0x65   : > { %v268_v52 = vadd.f32 1e-05, %v266_v51  ;;  %562 = vrcp.f32 %v267_v50 }
  0x67   : > { %564 = vrcp.f32 %v268_v52 }
  0x72   : > { %v563_v53 = vpop.eup %562 }
  0x74   : > { %v565_v54 = vpop.eup %564 }
  0x75   : > { %v275_v55 = vcombine.low %v563_v53, %v565_v54 }
  0x77   : > { %v277_v56 = vmul.f32 %v275_v55, %v232_v22 }
  0x79   : > { %v286_v57 = vcombine.high %v277_v56, %v277_v56 }
  0x7b   : > { %482 = vmatprep.subr.msk.mxu0 %vm211_vm0, %v286_v57 }
  0x7c   : > { %483 = vmatpush1.msk.msra.mxu0 %vm211_vm0, %v277_v56 }
  0x7d   : > { %484 = vmatmul.mubr.msk.f32.vlgmr.msra.gmra.mxu0 %vm287_vm5, %v278_v58 }
  0xa7   : > { %v283_v59 = vpop.permute.xlu0 %282 }
 0x13d   : > { %v361_v60 = vpop.f32.mrf.mxu0 }
 0x13e   : > { %v362_v62 = vadd.f32 %v361_v60, %v283_v59 }
 0x13f   : > { %v363_v61 = vpop.f32.mrf.mxu0 }
 0x140   : > { %v364_v63 = vadd.f32 %v363_v61, %v283_v59 }
 0x142   : > { %v368_v0 = vcombine.low %v362_v62, %v364_v63 }
 0x144   : > { %370 = vst [vmem:[%s204_s7] sm:$0xff] %v368_v0 }
 0x145   : > { %607 = shalt.err (!%p604_p3)
}
 0x146   : > { %s608_s28 = scalar_lea.hbm %s386_s11, 128  ;;  %s612_s30 = scalar_lea.hbm %s853_s3, 256 }
 0x147   : > { %p609_p5 = scmp.ne.s32.totalorder %s386_s11, %s608_s28  ;;  %p613_p10 = scmp.lt.s32.totalorder %s386_s11, %s853_s3 }
 0x148   : > { %p614_p4 = scmp.lt.s32.totalorder %s612_s30, %s608_s28 }
 0x149   : > { %p610_p6 = pnand %p609_p5, %p751_p9 }
 0x14a   : > { %p615_p13 = por %p614_p4, %p613_p10 }
 0x14b   : > { %p611_p7 = pneg %p610_p6 }
 0x14d   : > { %p616_p8 = pnand %p615_p13, %p611_p7 }
 0x14f   : > { %619 = shalt.err (!%p616_p8)
}
 0x150   : > { %494 = dma.vmem_to_hbm [thread:$0]  (%p751_p9), %s389_s8, 128, %s386_s11, %s372_s18  }
 0x151 PF: > { %s400_s5 = sand.u32 1, %s654_s12   ;;  %p859_p11 = scmp.ne.s32.totalorder %s857_s27, 0 }
 0x152   : > { %p860_p12 = scmp.ge.s32.totalorder %s674_s17, 2  ;;  %s401_s6 = scalar_lea.sflag [#allocation4], %s400_s5 }
 0x154   : > { %p501_p0 = pnand %p860_p12, %p859_p11 }
 0x156   : > { %p502_p1 = pneg %p501_p0 }
 0x158   : > { %649 = dma.done.wait (%p502_p1), %s401_s6, 128  }
 0x159   : > { %651 = vsyncadd (%p502_p1), %s401_s6, 4294967168  ;;  %s19_s17 = sadd.s32 1, %s674_s17   ;;  %s861_s12 = smov %s658_s13 }
 0x15a   : > { %p16_p2 = scmp.ge.s32.totalorder %s19_s17, 4   ;;  %s862_s13 = smov %s662_s14 }
 0x15b   : > { %s863_s14 = smov %s756_s26  ;;  %s864_s15 = smov %s670_s16 }
 0x15c   : > { %s865_s16 = smov %s867_s20  ;;  %18 = sbr.rel (!%p16_p2) target bundleno = 6 (0x6), region = 77 }
 0x161   :  { %406 = vsyncpa [#allocation3], 1 }
 0x162   :  { %408 = vsyncpa [#allocation3 + $0x1], 1 }
 0x163   :  { %409 = vsyncpa [#allocation4], 1 }
 0x164   :  { %411 = vsyncpa [#allocation4 + $0x1], 1 }

</bundles_post_ra>
